<compile_context>
chip_gen: v6e
topology: v6e:2x2x1
jax: 0.10.0
libtpu: 0.0.40
codegen_flags: <defaults>
</compile_context>

<pallas_src>
import functools

import jax
import jax.numpy as jnp
from jax.experimental import pallas as pl
from jax.experimental.pallas import tpu as pltpu

N_CLASSES = 10


def _round_up(x: int, m: int) -> int:
    return ((x + m - 1) // m) * m


def _linear_kernel(x_ref, w_ref, b_ref, o_ref, *, d_total, tk, need_k_mask):
    """One (batch_tile, k_tile) step of y = x @ W^T + b.

    The f32 output block is resident across the K grid axis (same block index
    for every k) and doubles as the accumulator; the bias is folded into the
    k == 0 initialization.
    """
    k = pl.program_id(1)

    @pl.when(k == 0)
    def _():
        o_ref[...] = jnp.broadcast_to(b_ref[...], o_ref.shape)

    x = x_ref[...]                                   # (tb, tk) f32 straight from HBM
    if need_k_mask:
        # Last K tile overhangs D: zero the tail so stale VMEM contents
        # (possibly NaN/Inf) never reach the MXU.  W's tail columns are
        # zero-padded outside, so masking x alone is sufficient.
        col = jax.lax.broadcasted_iota(jnp.int32, x.shape, dimension=1)
        x = jnp.where(k * tk + col < d_total, x, 0.0)

    # In-kernel bf16 cast (halves MXU input width), f32 accumulation.
    # Contract on the last (lane) dim of both operands: x (tb, tk) x W (N, tk).
    o_ref[...] += jax.lax.dot_general(
        x.astype(jnp.bfloat16),
        w_ref[...],
        dimension_numbers=(((1,), (1,)), ((), ())),
        preferred_element_type=jnp.float32,
    )


@functools.partial(jax.jit, static_argnames=("max_tk", "max_tb"))
def test_classifier_forward(x, w, b, *, max_tk=8192, max_tb=256):
    """x: (B, C, H, W) f32; w: torch-layout (10, D); b: (10,). Returns (B, 10) f32."""
    B = x.shape[0]
    x_flat = x.reshape(B, -1)            # matches torch x.view(B, -1); no copy
    D = x_flat.shape[1]
    N = w.shape[0]

    # ---- K (feature) tiling -------------------------------------------------
    if D <= max_tk:
        tk = D                           # full-dim block: no mask, no W pad
        grid_k = 1
        need_k_mask = False
        w_in = w.astype(jnp.bfloat16)    # tiny (10, D) cast; negligible
    else:
        tk = max_tk                      # multiple of 128
        grid_k = pl.cdiv(D, tk)
        need_k_mask = (D % tk) != 0
        Dp = grid_k * tk
        # Pad only the tiny weight (10 rows); x is never copied.
        w_in = jnp.pad(w, ((0, 0), (0, Dp - D))).astype(jnp.bfloat16)

    # ---- batch tiling ---------------------------------------------------------
    if B < 16:
        tb = B                           # single full-dim tile for tiny batches
    else:
        # >= 2 batch tiles so the "parallel" axis shards across v7x's 2 TCs.
        tb = min(max_tb, _round_up(pl.cdiv(B, 2), 8))
    grid_b = pl.cdiv(B, tb)

    kernel = functools.partial(
        _linear_kernel, d_total=D, tk=tk, need_k_mask=need_k_mask)

    out = pl.pallas_call(
        kernel,
        out_shape=jax.ShapeDtypeStruct((B, N), jnp.float32),
        grid_spec=pltpu.PrefetchScalarGridSpec(
            num_scalar_prefetch=0,
            grid=(grid_b, grid_k),                               # reduction axis last
            in_specs=[
                pl.BlockSpec((tb, tk), lambda bi, ki: (bi, ki)),  # x tile (f32)
                pl.BlockSpec((N, tk), lambda bi, ki: (0, ki)),    # W tile, torch layout
                pl.BlockSpec((1, N), lambda bi, ki: (0, 0)),      # bias (resident)
            ],
            out_specs=pl.BlockSpec((tb, N), lambda bi, ki: (bi, 0)),
        ),
        compiler_params=pltpu.CompilerParams(
            dimension_semantics=("parallel", "arbitrary"),
            # ~17 MiB worst-case footprint with default tiles; 48 MiB clears the
            # v5e 16 MiB scoped default and stays under v7x's 64 MiB physical.
            vmem_limit_bytes=48 << 20,
        ),
    )(x_flat, w_in, b.reshape(1, N).astype(jnp.float32))

    return out


def _make_linear_params(key, D, N):
    """Deterministic Linear init mimicking torch: U(-1/sqrt(D), 1/sqrt(D))."""
    kw, kb = jax.random.split(key)
    bound = 1.0 / jnp.sqrt(jnp.float32(D))
    w = jax.random.uniform(kw, (N, D), minval=-bound, maxval=bound,
                           dtype=jnp.float32)      # torch layout (out, in)
    b = jax.random.uniform(kb, (N,), minval=-bound, maxval=bound,
                           dtype=jnp.float32)
    return w, b


def _check(x, w, b, **kw):
    y = jax.block_until_ready(test_classifier_forward(x, w, b, **kw))
    B = x.shape[0]
    x_flat = x.reshape(B, -1)

    assert y.shape == (B, w.shape[0])
    assert bool(jnp.isfinite(y).all()), "non-finite output"

    # Reference with the same bf16-input / f32-accumulate recipe (tight-ish tol).
    y_bf16_ref = jnp.dot(x_flat.astype(jnp.bfloat16), w.T.astype(jnp.bfloat16),
                         preferred_element_type=jnp.float32) + b
    # Full-precision torch-equivalent reference (loose tol for bf16 rounding).
    y_f32_ref = x_flat @ w.T + b

    assert jnp.allclose(y, y_bf16_ref, atol=5e-3, rtol=5e-3), "mismatch vs bf16 ref"
    assert jnp.allclose(y, y_f32_ref, atol=6e-2, rtol=6e-2), "mismatch vs f32 ref"


if __name__ == "__main__":
    key = jax.random.PRNGKey(0)
    k1, k2, k3, k4, k5, k6 = jax.random.split(key, 6)

    # Case 1: image_size=16 -> D = 3*16*16 = 768; B=2.
    # Single K step, single full-dim batch tile (the canonical small case).
    B, C, H, W = 2, 3, 16, 16
    x = jax.random.normal(k1, (B, C, H, W), dtype=jnp.float32)
    w, b = _make_linear_params(k2, C * H * W, N_CLASSES)
    _check(x, w, b)

    # Case 2: image_size=28 -> D = 2352 with max_tk=1024: exercises the
    # multi-K-step path with a partial last K tile (in-kernel tail mask,
    # zero-padded weights).
    B2, H2 = 4, 28
    x2 = jax.random.normal(k3, (B2, C, H2, H2), dtype=jnp.float32)
    w2, b2 = _make_linear_params(k4, C * H2 * H2, N_CLASSES)
    _check(x2, w2, b2, max_tk=1024)

    # Case 3: B=20, image_size=16: exercises >=2 batch tiles (tb=16, grid=(2,1))
    # with a partial last batch block (ragged-edge writeback is clipped).
    B3 = 20
    x3 = jax.random.normal(k5, (B3, C, H, W), dtype=jnp.float32)
    w3, b3 = _make_linear_params(k6, C * H * W, N_CLASSES)
    _check(x3, w3, b3)

    print("KERNEL_OK")
</pallas_src>

<mosaic_0001>
module attributes {stable_mosaic.version = 11 : i64} {
  func.func @_linear_kernel(%arg0: i32, %arg1: i32, %arg2: memref<2x768xf32, #tpu.memory_space<vmem>>, %arg3: memref<10x768xbf16, #tpu.memory_space<vmem>>, %arg4: memref<1x10xf32, #tpu.memory_space<vmem>>, %arg5: memref<2x10xf32, #tpu.memory_space<vmem>>) attributes {dimension_semantics = [#tpu.dimension_semantics<parallel>, #tpu.dimension_semantics<arbitrary>], iteration_bounds = array<i64: 1, 1>, scalar_prefetch = 0 : i64, scratch_operands = 0 : i64, tpu.core_type = #tpu.core_type<tc>, window_params = [{transform_indices = @transform_0, window_bounds = array<i64: 2, 768>}, {transform_indices = @transform_1, window_bounds = array<i64: 10, 768>}, {pipeline_mode = #tpu.pipeline_mode<synchronous>, transform_indices = @transform_2, window_bounds = array<i64: 1, 10>}, {transform_indices = @transform_3, window_bounds = array<i64: 2, 10>}]} {
    %c0_i32 = arith.constant 0 : i32
    %0 = arith.cmpi eq, %arg1, %c0_i32 : i32
    %1 = arith.extui %0 : i1 to i32
    %c0_i32_0 = arith.constant 0 : i32
    %2 = arith.cmpi ne, %1, %c0_i32_0 : i32
    scf.if %2 {
      %c0_8 = arith.constant 0 : index
      %c0_9 = arith.constant 0 : index
      %10 = vector.load %arg4[%c0_8, %c0_9] : memref<1x10xf32, #tpu.memory_space<vmem>>, vector<1x10xf32>
      %11 = vector.shape_cast %10 : vector<1x10xf32> to vector<1x10xf32>
      %12 = vector.broadcast %11 : vector<1x10xf32> to vector<2x10xf32>
      %c0_10 = arith.constant 0 : index
      %c0_11 = arith.constant 0 : index
      %13 = vector.load %arg5[%c0_10, %c0_11] : memref<2x10xf32, #tpu.memory_space<vmem>>, vector<2x10xf32>
      tpu.vector_store %arg5[%c0_10, %c0_11], %12 {strides = array<i32>} : memref<2x10xf32, #tpu.memory_space<vmem>>, vector<2x10xf32>,
    } else {
    }
    %c0 = arith.constant 0 : index
    %c0_1 = arith.constant 0 : index
    %3 = vector.load %arg2[%c0, %c0_1] : memref<2x768xf32, #tpu.memory_space<vmem>>, vector<2x768xf32>
    %c0_2 = arith.constant 0 : index
    %c0_3 = arith.constant 0 : index
    %4 = vector.load %arg5[%c0_2, %c0_3] : memref<2x10xf32, #tpu.memory_space<vmem>>, vector<2x10xf32>
    %5 = arith.truncf %3 : vector<2x768xf32> to vector<2x768xbf16>
    %c0_4 = arith.constant 0 : index
    %c0_5 = arith.constant 0 : index
    %6 = vector.load %arg3[%c0_4, %c0_5] : memref<10x768xbf16, #tpu.memory_space<vmem>>, vector<10x768xbf16>
    %cst = arith.constant dense<0.000000e+00> : vector<2x10xf32>
    %7 = tpu.matmul %5, %6, %cst {dimension_numbers = #tpu.dot_dimension_numbers<[1], [1], [0], [0], [0, 0, 1, 0], [], []>} : vector<2x768xbf16>, vector<10x768xbf16>, vector<2x10xf32> -> vector<2x10xf32>
    %8 = arith.addf %4, %7 : vector<2x10xf32>
    %c0_6 = arith.constant 0 : index
    %c0_7 = arith.constant 0 : index
    %9 = vector.load %arg5[%c0_6, %c0_7] : memref<2x10xf32, #tpu.memory_space<vmem>>, vector<2x10xf32>
    tpu.vector_store %arg5[%c0_6, %c0_7], %8 {strides = array<i32>} : memref<2x10xf32, #tpu.memory_space<vmem>>, vector<2x10xf32>,
    return
  }
  func.func @transform_0(%arg0: i32, %arg1: i32) -> (i32, i32) {
    %c0_i32 = arith.constant 0 : i32
    return %arg0, %arg1 : i32, i32
  }
  func.func @transform_1(%arg0: i32, %arg1: i32) -> (i32, i32) {
    %c0_i32 = arith.constant 0 : i32
    %c0_i32_0 = arith.constant 0 : i32
    return %c0_i32, %arg1 : i32, i32
  }
  func.func @transform_2(%arg0: i32, %arg1: i32) -> (i32, i32) {
    %c0_i32 = arith.constant 0 : i32
    %c0_i32_0 = arith.constant 0 : i32
    %c0_i32_1 = arith.constant 0 : i32
    return %c0_i32, %c0_i32_0 : i32, i32
  }
  func.func @transform_3(%arg0: i32, %arg1: i32) -> (i32, i32) {
    %c0_i32 = arith.constant 0 : i32
    %c0_i32_0 = arith.constant 0 : i32
    return %arg0, %c0_i32 : i32, i32
  }
}

</mosaic_0001>

<bundles_post_ra>
// kernel: test_classifier_forward.1
= control target key start
LH: loop header
LB: loop body
LE: loop exit
PB: predicated region body
PF: predicated region fallthrough
CT: control target
= control target key end

     0   :  { %v38_v1 = vlaneseq  ;;  %v286_v6 = vmov 1983009808   ;;  %s340_s0 = inlined_call_operand.vmem [shape: f32[2,768], index: 0, kind: input, shape index: {}]   ;;  %s341_s1 = inlined_call_operand.vmem [shape: bf16[10,768], index: 1, kind: input, shape index: {}]   ;;  %s342_s2 = inlined_call_operand.vmem [shape: f32[1,10], index: 2, kind: input, shape index: {}]   ;;  %s343_s3 = inlined_call_operand.hbm [shape: f32[2,10], index: 3, kind: output, shape index: {}]  }
   0x1   :  { %v254_v0 = vld [vmem:[%s341_s1 + $0x4] ss:$24 sps:$4 sm:$0x1f]   ;;  %v256_v2 = vld [vmem:[%s341_s1] ss:$24 sps:$4 sm:$0x1f]   ;;  %v36_v7 = vunpack.c.l.s4 %v286_v6 }
   0x2   :  { %121 = vmatprep.subr.bf16.mxu0 %v254_v0  ;;  %v257_v3 = vld [vmem:[%s341_s1 + $0xc] ss:$24 sps:$4 sm:$0x1f]   ;;  %v259_v4 = vld [vmem:[%s341_s1 + $0x8] ss:$24 sps:$4 sm:$0x1f]  }
   0x3   :  { %122 = vmatpush1.bf16.xpose.msra.mxu0 %v256_v2  ;;  %v29_v5 = vld [vmem:[%s340_s0] sm:$0xff]  ;;  %161 = vmatprep.subr.bf16.mxu1 %v257_v3  ;;  %v39_v8 = vshrl.u32 %v38_v1, 7  ;;  %v263_v9 = vld [vmem:[%s341_s1 + $0x14] ss:$24 sps:$4 sm:$0x1f]  }
   0x4   :  { %162 = vmatpush1.bf16.xpose.msra.mxu1 %v259_v4 }
   0x5   :  { %8 = vsyncpa [#allocation3], 0  ;;  %v37_v10 = vunpack.c.0.s8 %v36_v7  ;;  %v34_v11 = vcombine.high %v29_v5, %v29_v5  ;;  %201 = vmatprep.subr.bf16.mxu0 %v263_v9  ;;  %v245_v12 = vld.sshfl [vmem:[%s340_s0 + $0x8] sm:$0x33 pattern:$0x76325410] }
   0x6   :  { %v58_v16 = vcombine.high %v245_v12, %v245_v12  ;;  %v261_v23 = vld [vmem:[%s341_s1 + $0x10] ss:$24 sps:$4 sm:$0x1f]   ;;  %v69_v25 = vpack.c.bf16 %v245_v12, %v245_v12  ;;  %v244_v26 = vld [vmem:[%s342_s2] ss:$0 sm:$0xff]  ;;  %vm27_vm0 = vcmask 74752  }
   0x7   :  { %v40_v13 = vsub.s32 %v37_v10, %v39_v8  ;;  %28 = vst.msk [vmem:[#allocation2] sm:$0x3] %vm27_vm0, %v244_v26  ;;  %s287_s1 = smov [#allocation2]  }
   0x8   :  { %v70_v24 = vpack.c.bf16 %v58_v16, %v58_v16  ;;  %s236_s29 = sshll.u32 %s287_s1, 4  ;;  %s237_s29 = int_to_ptr.vmem [resolvable:$true] %s236_s29 }
   0x9   :  { %v41_v14 = vrot.slane %v29_v5, %v40_v13  ;;  %v48_v15 = vrot.slane %v34_v11, %v40_v13  ;;  %s264_s2 = scalar_lea.vmem %s237_s29, 32  ;;  %p269_p1 = scmp.lt.s32.totalorder %s237_s29, %s237_s29 }
   0xa   :  { %p265_p0 = scmp.ne.s32.totalorder %s237_s29, %s264_s2  ;;  %p270_p2 = scmp.lt.s32.totalorder %s264_s2, %s264_s2 }
   0xb   :  { %v49_v17 = vcombine.high %v41_v14, %v41_v14  ;;  %v50_v18 = vcombine.high %v48_v15, %v48_v15  ;;  %v65_v19 = vpack.c.bf16 %v41_v14, %v41_v14  ;;  %v67_v20 = vpack.c.bf16 %v48_v15, %v48_v15 }
   0xc   :  { %p271_p3 = por %p270_p2, %p269_p1 }
   0xd   :  { %v66_v21 = vpack.c.bf16 %v49_v17, %v49_v17  ;;  %v68_v22 = vpack.c.bf16 %v50_v18, %v50_v18 }
   0xe   :  { %v31_v36 = vld [vmem:[#allocation2] sm:$0x3]  ;;  %p272_p4 = pnand %p271_p3, %p265_p0 }
   0xf   :  { %139 = vmatprep.mubr.bf16.mxu0 %v66_v21  ;;  %179 = vmatprep.mubr.bf16.mxu1 %v68_v22 }
  0x10   :  { %140 = vmatmul.mubr.bf16.vlgmr.msra.gmra.mxu0 %v65_v19  ;;  %180 = vmatmul.mubr.bf16.vlgmr.msra.gmra.mxu1 %v67_v20 }
  0x11   :  { %202 = vmatpush1.bf16.xpose.msra.mxu0 %v261_v23  ;;  %219 = vmatprep.mubr.bf16.mxu0 %v70_v24 }
  0x18   :  { %220 = vmatmul.mubr.bf16.vlgmr.msra.gmra.mxu0 %v69_v25 }
  0xd0   :  { %v141_v27 = vpop.f32.mrf.mxu0  ;;  %v181_v28 = vpop.f32.mrf.mxu1 }
  0xd1   :  { %v182_v35 = vadd.f32 %v181_v28, %v141_v27 }
  0xd2   :  { %v143_v29 = vpop.f32.mrf.mxu0  ;;  %v183_v30 = vpop.f32.mrf.mxu1 }
  0xd4   :  { %v144_v31 = vpop.f32.mrf.mxu0  ;;  %v184_v32 = vpop.f32.mrf.mxu1 }
  0xd6   :  { %v145_v33 = vpop.f32.mrf.mxu0  ;;  %v185_v34 = vpop.f32.mrf.mxu1 }
  0xd8   :  { %v221_v37 = vpop.f32.mrf.mxu0 }
  0xd9   :  { %v222_v38 = vadd.f32 %v221_v37, %v182_v35 }
  0xda   :  { %v223_v39 = vpop.f32.mrf.mxu0 }
  0xdb   :  { %v227_v40 = vadd.f32 %v222_v38, %v31_v36 }
  0xdc   :  { %v224_v41 = vpop.f32.mrf.mxu0 }
  0xdd   :  { %229 = vst.msk [vmem:[#allocation2] sm:$0x3] %vm27_vm0, %v227_v40 }
  0xde   :  { %v225_v42 = vpop.f32.mrf.mxu0 }
  0xdf   :  { %275 = shalt.err (!%p272_p4)
}
  0xe0   :  { %239 = dma.vmem_to_hbm [thread:$0]  %s237_s29, 32, %s343_s3, [#allocation3]  }
  0xe1   :  { %284 = dma.done.wait [#allocation3], 32  }
  0xe2   :  { %285 = vsyncadd [#allocation3], 4294967264 }
  0xe3   :  { %243 = vsyncpa [#allocation3], 1 }

</bundles_post_ra>
